<compile_context>
chip_gen: v5e
topology: v5e:2x2
jax: 0.10.0
libtpu: 0.0.40
codegen_flags: <defaults>
</compile_context>

<pallas_src>
import functools

import jax
import jax.numpy as jnp
from jax.experimental import pallas as pl
from jax.experimental.pallas import tpu as pltpu


_FAST_PATH_BYTES = 64 * 1024           # below this, jnp.concatenate wins
_VMEM_BUDGET_BYTES = 48 * 1024 * 1024  # conservative: fits v7x's 64 MiB VMEM
_VMEM_LIMIT_BYTES = 60 * 1024 * 1024   # scoped-VMEM limit requested from Mosaic
_MAX_BATCH_TILE = 1024                 # copy roofline is flat past ~512 rows


def _round_up(x, m):
    return ((x + m - 1) // m) * m


def _sublane(dtype):
    """Rows per (sublane x lane) vreg tile for this dtype (8/16/32)."""
    return max(8, 32 // max(1, jnp.dtype(dtype).itemsize))


def _concat_kernel(offsets, sizes, *refs):
    """Copy each input tile into its (static) column range of the output tile."""
    *in_refs, out_ref = refs
    for in_ref, off, size in zip(in_refs, offsets, sizes):
        out_ref[:, off:off + size] = in_ref[...]


def _pick_batch_tile(batch, total_cols, itemsize, dtype):
    sub = _sublane(dtype)
    # Per-row VMEM cost: double-buffered input tiles (summing to total_cols
    # columns) + double-buffered output tile (total_cols wide).
    bytes_per_row = 2 * (total_cols + total_cols) * itemsize
    tb = max(1, _VMEM_BUDGET_BYTES // max(1, bytes_per_row))
    tb = min(tb, _MAX_BATCH_TILE, _round_up(batch, sub))
    tb = max(sub, (tb // sub) * sub)
    return tb


def concat_dim1(xs, *, batch_tile=None):
    """Pallas equivalent of torch.cat(xs, dim=1) for a list of 2-D arrays."""
    xs = list(xs)
    assert len(xs) >= 1
    if len(xs) == 1:
        return xs[0]

    same_dtype = all(x.dtype == xs[0].dtype for x in xs)
    all_2d = all(x.ndim == 2 and x.shape[0] == xs[0].shape[0] for x in xs)
    if not (same_dtype and all_2d):
        # Preserve torch.cat semantics for layouts this kernel doesn't cover.
        return jnp.concatenate(xs, axis=1)

    batch = int(xs[0].shape[0])
    dtype = xs[0].dtype
    itemsize = jnp.dtype(dtype).itemsize

    sizes = tuple(int(x.shape[1]) for x in xs)
    offsets = tuple(int(sum(sizes[:i])) for i in range(len(sizes)))
    total = int(sum(sizes))

    # Fast path: for KiB-scale inputs the pallas_call launch / per-step
    # overhead dwarfs the copy; XLA's concatenate is already a fused copy.
    if batch_tile is None and batch * total * itemsize <= _FAST_PATH_BYTES:
        return jnp.concatenate(xs, axis=1)

    sub = _sublane(dtype)
    if batch_tile is None:
        tb = _pick_batch_tile(batch, total, itemsize, dtype)
    else:
        tb = max(sub, (int(batch_tile) // sub) * sub)

    grid = (pl.cdiv(batch, tb),)
    kernel = functools.partial(_concat_kernel, offsets, sizes)

    # Blocks are full-width along features (so non-(8,128) widths stay legal)
    # and tiled along batch for pipelining.
    in_specs = [pl.BlockSpec((tb, s), lambda i: (i, 0)) for s in sizes]
    out_spec = pl.BlockSpec((tb, total), lambda i: (i, 0))

    return pl.pallas_call(
        kernel,
        out_shape=jax.ShapeDtypeStruct((batch, total), dtype),
        grid=grid,
        in_specs=in_specs,
        out_specs=out_spec,
        compiler_params=pltpu.CompilerParams(
            dimension_semantics=("parallel",),
            vmem_limit_bytes=_VMEM_LIMIT_BYTES,
        ),
    )(*xs)


class ConCatModule:
    """JAX/Pallas port of the PyTorch ConCatModule (concat along dim=1)."""

    def __call__(self, x):
        return concat_dim1(list(x))


if __name__ == "__main__":
    key = jax.random.PRNGKey(0)
    k1, k2, k3, k4 = jax.random.split(key, 4)

    module = ConCatModule()

    # Typical module usage (image feat + text feat): batch=2, hidden=32 each.
    # KiB-scale -> takes the fused-XLA fast path.
    img_feat = jax.random.normal(k1, (2, 32), dtype=jnp.float32)
    txt_feat = jax.random.normal(k2, (2, 32), dtype=jnp.float32)
    out_small = jax.block_until_ready(module([img_feat, txt_feat]))
    assert out_small.shape == (2, 64), out_small.shape
    assert jnp.allclose(out_small, jnp.concatenate([img_feat, txt_feat], axis=1))

    # Pallas path: batch-tiled pipelined copy with 128-aligned segment offsets.
    a = jax.random.normal(k3, (256, 512), dtype=jnp.float32)
    b = jax.random.normal(k4, (256, 256), dtype=jnp.float32)
    out = jax.block_until_ready(module([a, b]))
    ref = jnp.concatenate([a, b], axis=1)
    assert out.shape == (256, 768), out.shape
    assert jnp.allclose(out, ref), "mismatch vs reference concatenate"

    # Pallas path: multi-step grid, batch not divisible by the tile, and a
    # non-128-aligned segment offset (masked-store path).
    c = jax.random.normal(k1, (200, 96), dtype=jnp.float32)
    d = jax.random.normal(k2, (200, 160), dtype=jnp.float32)
    out2 = jax.block_until_ready(concat_dim1([c, d], batch_tile=64))
    assert out2.shape == (200, 256), out2.shape
    assert jnp.allclose(out2, jnp.concatenate([c, d], axis=1))

    print("KERNEL_OK")
</pallas_src>

<mosaic_0001>
module attributes {stable_mosaic.version = 11 : i64} {
  func.func @_concat_kernel(%arg0: i32, %arg1: memref<256x512xf32, #tpu.memory_space<vmem>>, %arg2: memref<256x256xf32, #tpu.memory_space<vmem>>, %arg3: memref<256x768xf32, #tpu.memory_space<vmem>>) attributes {dimension_semantics = [#tpu.dimension_semantics<parallel>], iteration_bounds = array<i64: 1>, scalar_prefetch = 0 : i64, scratch_operands = 0 : i64, tpu.core_type = #tpu.core_type<tc>, window_params = [{transform_indices = @transform_0, window_bounds = array<i64: 256, 512>}, {transform_indices = @transform_1, window_bounds = array<i64: 256, 256>}, {transform_indices = @transform_2, window_bounds = array<i64: 256, 768>}]} {
    %c0 = arith.constant 0 : index
    %c0_0 = arith.constant 0 : index
    %0 = vector.load %arg1[%c0, %c0_0] : memref<256x512xf32, #tpu.memory_space<vmem>>, vector<256x512xf32>
    %c0_1 = arith.constant 0 : index
    %c0_2 = arith.constant 0 : index
    %1 = vector.load %arg3[%c0_1, %c0_2] : memref<256x768xf32, #tpu.memory_space<vmem>>, vector<256x512xf32>
    tpu.vector_store %arg3[%c0_1, %c0_2], %0 {strides = array<i32>} : memref<256x768xf32, #tpu.memory_space<vmem>>, vector<256x512xf32>,
    %c0_3 = arith.constant 0 : index
    %c0_4 = arith.constant 0 : index
    %2 = vector.load %arg2[%c0_3, %c0_4] : memref<256x256xf32, #tpu.memory_space<vmem>>, vector<256x256xf32>
    %c0_5 = arith.constant 0 : index
    %c512 = arith.constant 512 : index
    %3 = vector.load %arg3[%c0_5, %c512] : memref<256x768xf32, #tpu.memory_space<vmem>>, vector<256x256xf32>
    tpu.vector_store %arg3[%c0_5, %c512], %2 {strides = array<i32>} : memref<256x768xf32, #tpu.memory_space<vmem>>, vector<256x256xf32>,
    return
  }
  func.func @transform_0(%arg0: i32) -> (i32, i32) {
    %c0_i32 = arith.constant 0 : i32
    %c0_i32_0 = arith.constant 0 : i32
    return %arg0, %c0_i32 : i32, i32
  }
  func.func @transform_1(%arg0: i32) -> (i32, i32) {
    %c0_i32 = arith.constant 0 : i32
    %c0_i32_0 = arith.constant 0 : i32
    return %arg0, %c0_i32 : i32, i32
  }
  func.func @transform_2(%arg0: i32) -> (i32, i32) {
    %c0_i32 = arith.constant 0 : i32
    %c0_i32_0 = arith.constant 0 : i32
    return %arg0, %c0_i32 : i32, i32
  }
}

</mosaic_0001>

<bundles_post_ra>
// kernel: tpu_custom_call.1
= control target key start
LH: loop header
LB: loop body
LE: loop exit
PB: predicated region body
PF: predicated region fallthrough
CT: control target
= control target key end

     0   :  { %7 = vsyncpa [#allocation3], 0  ;;  %s568_s0 = inlined_call_operand.hbm [shape: f32[256,512], index: 0, kind: input, shape index: {}]   ;;  %s569_s1 = inlined_call_operand.hbm [shape: f32[256,256], index: 1, kind: input, shape index: {}]   ;;  %s570_s2 = inlined_call_operand.hbm [shape: f32[256,768], index: 2, kind: output, shape index: {}]  }
   0x1   :  { %8 = vsyncpa [#allocation6], 0 }
   0x2   :  { %9 = vsyncpa [#allocation4], 0  ;;  %s14_s11 = sshll.u32 %s568_s0, 4  ;;  %s535_s12 = smov [#allocation2]   ;;  %s15_s11 = int_to_ptr.hbm [resolvable:$true] %s14_s11 }
   0x3   :  { %s16_s13 = sshll.u32 %s535_s12, 4  ;;  %s27_s16 = sshll.u32 %s569_s1, 4  ;;  %s17_s13 = int_to_ptr.vmem [resolvable:$true] %s16_s13  ;;  %s28_s16 = int_to_ptr.hbm [resolvable:$true] %s27_s16 }
   0x4   :  { %s536_s17 = smov 512   ;;  %s537_s18 = smov 32  }
   0x5   :  { %22 = dma.hbm_to_vmem [thread:$0]  %s15_s11, 16384, %s17_s13, [#allocation3], %s536_s17, %s536_s17, %s537_s18  }
   0x6   :  { %s538_s19 = smov [#allocation5]   ;;  %s539_s21 = smov 256  }
   0x7   :  { %s29_s20 = sshll.u32 %s538_s19, 4  ;;  %s540_s22 = smov 16   ;;  %s30_s20 = int_to_ptr.vmem [resolvable:$true] %s29_s20 }
   0x8   :  { %35 = dma.hbm_to_vmem [thread:$0]  %s28_s16, 8192, %s30_s20, [#allocation6], %s539_s21, %s539_s21, %s540_s22  }
   0x9   :  { %529 = dma.done.wait [#allocation3], 16384  }
   0xa   :  { %530 = vsyncadd [#allocation3], 4294950912 }
   0xb   :  { %531 = dma.done.wait [#allocation6], 8192  }
   0xc   :  { %532 = vsyncadd [#allocation6], 4294959104  ;;  %v44_v0 = vld [vmem:[#allocation2] sm:$0xff]  ;;  %v45_v1 = vld [vmem:[#allocation2 + $0x8] sm:$0xff]  ;;  %s541_s0 = smov [#allocation7]   ;;  %s434_s25 = sshll.u32 %s570_s2, 4  ;;  %s435_s25 = int_to_ptr.hbm [resolvable:$true] %s434_s25 }
   0xd   :  { %v46_v2 = vld [vmem:[#allocation2 + $0x10] sm:$0xff]  ;;  %172 = vst [vmem:[#allocation7] sm:$0xff] %v44_v0  ;;  %v47_v3 = vld [vmem:[#allocation2 + $0x18] sm:$0xff]  ;;  %v48_v4 = vld [vmem:[#allocation2 + $0x20] sm:$0xff]  ;;  %s432_s1 = sshll.u32 %s541_s0, 4  ;;  %s542_s26 = smov 768   ;;  %s433_s1 = int_to_ptr.vmem [resolvable:$true] %s432_s1 }
   0xe   :  { %173 = vst [vmem:[#allocation7 + $0x8] sm:$0xff] %v45_v1  ;;  %v49_v5 = vld [vmem:[#allocation2 + $0x28] sm:$0xff]  ;;  %v50_v6 = vld [vmem:[#allocation2 + $0x30] sm:$0xff]  ;;  %v51_v7 = vld [vmem:[#allocation2 + $0x38] sm:$0xff]  ;;  %s543_s27 = smov 48  }
   0xf   :  { %174 = vst [vmem:[#allocation7 + $0x10] sm:$0xff] %v46_v2  ;;  %v52_v8 = vld [vmem:[#allocation2 + $0x40] sm:$0xff]  ;;  %v53_v9 = vld [vmem:[#allocation2 + $0x48] sm:$0xff]  ;;  %v54_v10 = vld [vmem:[#allocation2 + $0x50] sm:$0xff] }
  0x10   :  { %175 = vst [vmem:[#allocation7 + $0x18] sm:$0xff] %v47_v3  ;;  %v55_v11 = vld [vmem:[#allocation2 + $0x58] sm:$0xff]  ;;  %v56_v12 = vld [vmem:[#allocation2 + $0x60] sm:$0xff]  ;;  %v57_v13 = vld [vmem:[#allocation2 + $0x68] sm:$0xff] }
  0x11   :  { %176 = vst [vmem:[#allocation7 + $0x30] sm:$0xff] %v48_v4  ;;  %v58_v14 = vld [vmem:[#allocation2 + $0x70] sm:$0xff]  ;;  %v59_v15 = vld [vmem:[#allocation2 + $0x78] sm:$0xff]  ;;  %v60_v16 = vld [vmem:[#allocation2 + $0x80] sm:$0xff] }
  0x12   :  { %177 = vst [vmem:[#allocation7 + $0x38] sm:$0xff] %v49_v5  ;;  %v61_v17 = vld [vmem:[#allocation2 + $0x88] sm:$0xff]  ;;  %v62_v18 = vld [vmem:[#allocation2 + $0x90] sm:$0xff]  ;;  %v63_v19 = vld [vmem:[#allocation2 + $0x98] sm:$0xff] }
  0x13   :  { %178 = vst [vmem:[#allocation7 + $0x40] sm:$0xff] %v50_v6  ;;  %v64_v20 = vld [vmem:[#allocation2 + $0xa0] sm:$0xff]  ;;  %v65_v21 = vld [vmem:[#allocation2 + $0xa8] sm:$0xff]  ;;  %v66_v22 = vld [vmem:[#allocation2 + $0xb0] sm:$0xff] }
  0x14   :  { %179 = vst [vmem:[#allocation7 + $0x48] sm:$0xff] %v51_v7  ;;  %v67_v23 = vld [vmem:[#allocation2 + $0xb8] sm:$0xff]  ;;  %v68_v24 = vld [vmem:[#allocation2 + $0xc0] sm:$0xff]  ;;  %v69_v25 = vld [vmem:[#allocation2 + $0xc8] sm:$0xff] }
  0x15   :  { %180 = vst [vmem:[#allocation7 + $0x60] sm:$0xff] %v52_v8  ;;  %v70_v26 = vld [vmem:[#allocation2 + $0xd0] sm:$0xff]  ;;  %v71_v27 = vld [vmem:[#allocation2 + $0xd8] sm:$0xff]  ;;  %v72_v28 = vld [vmem:[#allocation2 + $0xe0] sm:$0xff] }
  0x16   :  { %181 = vst [vmem:[#allocation7 + $0x68] sm:$0xff] %v53_v9  ;;  %v73_v29 = vld [vmem:[#allocation2 + $0xe8] sm:$0xff]  ;;  %v74_v30 = vld [vmem:[#allocation2 + $0xf0] sm:$0xff]  ;;  %v75_v31 = vld [vmem:[#allocation2 + $0xf8] sm:$0xff] }
  0x17   :  { %182 = vst [vmem:[#allocation7 + $0x70] sm:$0xff] %v54_v10  ;;  %v76_v32 = vld [vmem:[#allocation2 + $0x100] sm:$0xff]  ;;  %v77_v33 = vld [vmem:[#allocation2 + $0x108] sm:$0xff]  ;;  %v78_v34 = vld [vmem:[#allocation2 + $0x110] sm:$0xff] }
  0x18   :  { %183 = vst [vmem:[#allocation7 + $0x78] sm:$0xff] %v55_v11  ;;  %v79_v35 = vld [vmem:[#allocation2 + $0x118] sm:$0xff]  ;;  %v80_v36 = vld [vmem:[#allocation2 + $0x120] sm:$0xff]  ;;  %v81_v37 = vld [vmem:[#allocation2 + $0x128] sm:$0xff] }
  0x19   :  { %184 = vst [vmem:[#allocation7 + $0x90] sm:$0xff] %v56_v12  ;;  %v82_v38 = vld [vmem:[#allocation2 + $0x130] sm:$0xff]  ;;  %v83_v39 = vld [vmem:[#allocation2 + $0x138] sm:$0xff]  ;;  %v84_v40 = vld [vmem:[#allocation2 + $0x140] sm:$0xff] }
  0x1a   :  { %185 = vst [vmem:[#allocation7 + $0x98] sm:$0xff] %v57_v13  ;;  %v85_v41 = vld [vmem:[#allocation2 + $0x148] sm:$0xff]  ;;  %v86_v42 = vld [vmem:[#allocation2 + $0x150] sm:$0xff]  ;;  %v87_v43 = vld [vmem:[#allocation2 + $0x158] sm:$0xff] }
  0x1b   :  { %186 = vst [vmem:[#allocation7 + $0xa0] sm:$0xff] %v58_v14  ;;  %v88_v44 = vld [vmem:[#allocation2 + $0x160] sm:$0xff]  ;;  %v89_v45 = vld [vmem:[#allocation2 + $0x168] sm:$0xff]  ;;  %v90_v46 = vld [vmem:[#allocation2 + $0x170] sm:$0xff] }
  0x1c   :  { %187 = vst [vmem:[#allocation7 + $0xa8] sm:$0xff] %v59_v15  ;;  %v91_v47 = vld [vmem:[#allocation2 + $0x178] sm:$0xff]  ;;  %v92_v48 = vld [vmem:[#allocation2 + $0x180] sm:$0xff]  ;;  %v93_v49 = vld [vmem:[#allocation2 + $0x188] sm:$0xff] }
  0x1d   :  { %188 = vst [vmem:[#allocation7 + $0xc0] sm:$0xff] %v60_v16  ;;  %v94_v50 = vld [vmem:[#allocation2 + $0x190] sm:$0xff]  ;;  %v95_v51 = vld [vmem:[#allocation2 + $0x198] sm:$0xff]  ;;  %v96_v52 = vld [vmem:[#allocation2 + $0x1a0] sm:$0xff] }
  0x1e   :  { %189 = vst [vmem:[#allocation7 + $0xc8] sm:$0xff] %v61_v17  ;;  %v97_v53 = vld [vmem:[#allocation2 + $0x1a8] sm:$0xff]  ;;  %v98_v54 = vld [vmem:[#allocation2 + $0x1b0] sm:$0xff]  ;;  %v99_v55 = vld [vmem:[#allocation2 + $0x1b8] sm:$0xff] }
  0x1f   :  { %190 = vst [vmem:[#allocation7 + $0xd0] sm:$0xff] %v62_v18  ;;  %v100_v56 = vld [vmem:[#allocation2 + $0x1c0] sm:$0xff]  ;;  %v101_v57 = vld [vmem:[#allocation2 + $0x1c8] sm:$0xff]  ;;  %v102_v58 = vld [vmem:[#allocation2 + $0x1d0] sm:$0xff] }
  0x20   :  { %191 = vst [vmem:[#allocation7 + $0xd8] sm:$0xff] %v63_v19  ;;  %v103_v59 = vld [vmem:[#allocation2 + $0x1d8] sm:$0xff]  ;;  %v104_v60 = vld [vmem:[#allocation2 + $0x1e0] sm:$0xff]  ;;  %v105_v61 = vld [vmem:[#allocation2 + $0x1e8] sm:$0xff] }
  0x21   :  { %192 = vst [vmem:[#allocation7 + $0xf0] sm:$0xff] %v64_v20  ;;  %v106_v62 = vld [vmem:[#allocation2 + $0x1f0] sm:$0xff]  ;;  %v107_v63 = vld [vmem:[#allocation2 + $0x1f8] sm:$0xff]  ;;  %v108_v0 = vld [vmem:[#allocation2 + $0x200] sm:$0xff] }
  0x22   :  { %193 = vst [vmem:[#allocation7 + $0xf8] sm:$0xff] %v65_v21  ;;  %v109_v1 = vld [vmem:[#allocation2 + $0x208] sm:$0xff]  ;;  %v110_v2 = vld [vmem:[#allocation2 + $0x210] sm:$0xff]  ;;  %v111_v3 = vld [vmem:[#allocation2 + $0x218] sm:$0xff] }
  0x23   :  { %194 = vst [vmem:[#allocation7 + $0x100] sm:$0xff] %v66_v22  ;;  %v112_v4 = vld [vmem:[#allocation2 + $0x220] sm:$0xff]  ;;  %v113_v5 = vld [vmem:[#allocation2 + $0x228] sm:$0xff]  ;;  %v114_v6 = vld [vmem:[#allocation2 + $0x230] sm:$0xff] }
  0x24   :  { %195 = vst [vmem:[#allocation7 + $0x108] sm:$0xff] %v67_v23  ;;  %v115_v7 = vld [vmem:[#allocation2 + $0x238] sm:$0xff]  ;;  %v116_v8 = vld [vmem:[#allocation2 + $0x240] sm:$0xff]  ;;  %v117_v9 = vld [vmem:[#allocation2 + $0x248] sm:$0xff] }
  0x25   :  { %196 = vst [vmem:[#allocation7 + $0x120] sm:$0xff] %v68_v24  ;;  %v118_v10 = vld [vmem:[#allocation2 + $0x250] sm:$0xff]  ;;  %v119_v11 = vld [vmem:[#allocation2 + $0x258] sm:$0xff]  ;;  %v120_v12 = vld [vmem:[#allocation2 + $0x260] sm:$0xff] }
  0x26   :  { %197 = vst [vmem:[#allocation7 + $0x128] sm:$0xff] %v69_v25  ;;  %v121_v13 = vld [vmem:[#allocation2 + $0x268] sm:$0xff]  ;;  %v122_v14 = vld [vmem:[#allocation2 + $0x270] sm:$0xff]  ;;  %v123_v15 = vld [vmem:[#allocation2 + $0x278] sm:$0xff] }
  0x27   :  { %198 = vst [vmem:[#allocation7 + $0x130] sm:$0xff] %v70_v26  ;;  %v124_v16 = vld [vmem:[#allocation2 + $0x280] sm:$0xff]  ;;  %v125_v17 = vld [vmem:[#allocation2 + $0x288] sm:$0xff]  ;;  %v126_v18 = vld [vmem:[#allocation2 + $0x290] sm:$0xff] }
  0x28   :  { %199 = vst [vmem:[#allocation7 + $0x138] sm:$0xff] %v71_v27  ;;  %v127_v19 = vld [vmem:[#allocation2 + $0x298] sm:$0xff]  ;;  %v128_v20 = vld [vmem:[#allocation2 + $0x2a0] sm:$0xff]  ;;  %v129_v21 = vld [vmem:[#allocation2 + $0x2a8] sm:$0xff] }
  0x29   :  { %200 = vst [vmem:[#allocation7 + $0x150] sm:$0xff] %v72_v28  ;;  %v130_v22 = vld [vmem:[#allocation2 + $0x2b0] sm:$0xff]  ;;  %v131_v23 = vld [vmem:[#allocation2 + $0x2b8] sm:$0xff]  ;;  %v132_v24 = vld [vmem:[#allocation2 + $0x2c0] sm:$0xff] }
  0x2a   :  { %201 = vst [vmem:[#allocation7 + $0x158] sm:$0xff] %v73_v29  ;;  %v133_v25 = vld [vmem:[#allocation2 + $0x2c8] sm:$0xff]  ;;  %v134_v26 = vld [vmem:[#allocation2 + $0x2d0] sm:$0xff]  ;;  %v135_v27 = vld [vmem:[#allocation2 + $0x2d8] sm:$0xff] }
  0x2b   :  { %202 = vst [vmem:[#allocation7 + $0x160] sm:$0xff] %v74_v30  ;;  %v136_v28 = vld [vmem:[#allocation2 + $0x2e0] sm:$0xff]  ;;  %v137_v29 = vld [vmem:[#allocation2 + $0x2e8] sm:$0xff]  ;;  %v138_v30 = vld [vmem:[#allocation2 + $0x2f0] sm:$0xff] }
  0x2c   :  { %203 = vst [vmem:[#allocation7 + $0x168] sm:$0xff] %v75_v31  ;;  %v139_v31 = vld [vmem:[#allocation2 + $0x2f8] sm:$0xff] }
  0x2d   :  { %204 = vst [vmem:[#allocation7 + $0x180] sm:$0xff] %v76_v32  ;;  %v140_v32 = vld [vmem:[#allocation2 + $0x300] sm:$0xff] }
  0x2e   :  { %205 = vst [vmem:[#allocation7 + $0x188] sm:$0xff] %v77_v33  ;;  %v141_v33 = vld [vmem:[#allocation2 + $0x308] sm:$0xff] }
  0x2f   :  { %206 = vst [vmem:[#allocation7 + $0x190] sm:$0xff] %v78_v34  ;;  %v142_v34 = vld [vmem:[#allocation2 + $0x310] sm:$0xff] }
  0x30   :  { %207 = vst [vmem:[#allocation7 + $0x198] sm:$0xff] %v79_v35  ;;  %v143_v35 = vld [vmem:[#allocation2 + $0x318] sm:$0xff] }
  0x31   :  { %208 = vst [vmem:[#allocation7 + $0x1b0] sm:$0xff] %v80_v36  ;;  %v144_v36 = vld [vmem:[#allocation2 + $0x320] sm:$0xff] }
  0x32   :  { %209 = vst [vmem:[#allocation7 + $0x1b8] sm:$0xff] %v81_v37  ;;  %v145_v37 = vld [vmem:[#allocation2 + $0x328] sm:$0xff] }
  0x33   :  { %210 = vst [vmem:[#allocation7 + $0x1c0] sm:$0xff] %v82_v38  ;;  %v146_v38 = vld [vmem:[#allocation2 + $0x330] sm:$0xff] }
  0x34   :  { %211 = vst [vmem:[#allocation7 + $0x1c8] sm:$0xff] %v83_v39  ;;  %v147_v39 = vld [vmem:[#allocation2 + $0x338] sm:$0xff] }
  0x35   :  { %212 = vst [vmem:[#allocation7 + $0x1e0] sm:$0xff] %v84_v40  ;;  %v148_v40 = vld [vmem:[#allocation2 + $0x340] sm:$0xff] }
  0x36   :  { %213 = vst [vmem:[#allocation7 + $0x1e8] sm:$0xff] %v85_v41  ;;  %v149_v41 = vld [vmem:[#allocation2 + $0x348] sm:$0xff] }
  0x37   :  { %214 = vst [vmem:[#allocation7 + $0x1f0] sm:$0xff] %v86_v42  ;;  %v150_v42 = vld [vmem:[#allocation2 + $0x350] sm:$0xff] }
  0x38   :  { %215 = vst [vmem:[#allocation7 + $0x1f8] sm:$0xff] %v87_v43  ;;  %v151_v43 = vld [vmem:[#allocation2 + $0x358] sm:$0xff] }
  0x39   :  { %216 = vst [vmem:[#allocation7 + $0x210] sm:$0xff] %v88_v44  ;;  %v152_v44 = vld [vmem:[#allocation2 + $0x360] sm:$0xff] }
  0x3a   :  { %217 = vst [vmem:[#allocation7 + $0x218] sm:$0xff] %v89_v45  ;;  %v153_v45 = vld [vmem:[#allocation2 + $0x368] sm:$0xff] }
  0x3b   :  { %218 = vst [vmem:[#allocation7 + $0x220] sm:$0xff] %v90_v46  ;;  %v154_v46 = vld [vmem:[#allocation2 + $0x370] sm:$0xff] }
  0x3c   :  { %219 = vst [vmem:[#allocation7 + $0x228] sm:$0xff] %v91_v47  ;;  %v155_v47 = vld [vmem:[#allocation2 + $0x378] sm:$0xff] }
  0x3d   :  { %220 = vst [vmem:[#allocation7 + $0x240] sm:$0xff] %v92_v48  ;;  %v156_v48 = vld [vmem:[#allocation2 + $0x380] sm:$0xff] }
  0x3e   :  { %221 = vst [vmem:[#allocation7 + $0x248] sm:$0xff] %v93_v49  ;;  %v157_v49 = vld [vmem:[#allocation2 + $0x388] sm:$0xff] }
  0x3f   :  { %222 = vst [vmem:[#allocation7 + $0x250] sm:$0xff] %v94_v50  ;;  %v158_v50 = vld [vmem:[#allocation2 + $0x390] sm:$0xff] }
  0x40   :  { %223 = vst [vmem:[#allocation7 + $0x258] sm:$0xff] %v95_v51  ;;  %v159_v51 = vld [vmem:[#allocation2 + $0x398] sm:$0xff] }
  0x41   :  { %224 = vst [vmem:[#allocation7 + $0x270] sm:$0xff] %v96_v52  ;;  %v160_v52 = vld [vmem:[#allocation2 + $0x3a0] sm:$0xff] }
  0x42   :  { %225 = vst [vmem:[#allocation7 + $0x278] sm:$0xff] %v97_v53  ;;  %v161_v53 = vld [vmem:[#allocation2 + $0x3a8] sm:$0xff] }
  0x43   :  { %226 = vst [vmem:[#allocation7 + $0x280] sm:$0xff] %v98_v54  ;;  %v162_v54 = vld [vmem:[#allocation2 + $0x3b0] sm:$0xff] }
  0x44   :  { %227 = vst [vmem:[#allocation7 + $0x288] sm:$0xff] %v99_v55  ;;  %v163_v55 = vld [vmem:[#allocation2 + $0x3b8] sm:$0xff] }
  0x45   :  { %228 = vst [vmem:[#allocation7 + $0x2a0] sm:$0xff] %v100_v56  ;;  %v164_v56 = vld [vmem:[#allocation2 + $0x3c0] sm:$0xff] }
  0x46   :  { %229 = vst [vmem:[#allocation7 + $0x2a8] sm:$0xff] %v101_v57  ;;  %v165_v57 = vld [vmem:[#allocation2 + $0x3c8] sm:$0xff] }
  0x47   :  { %230 = vst [vmem:[#allocation7 + $0x2b0] sm:$0xff] %v102_v58  ;;  %v166_v58 = vld [vmem:[#allocation2 + $0x3d0] sm:$0xff] }
  0x48   :  { %231 = vst [vmem:[#allocation7 + $0x2b8] sm:$0xff] %v103_v59  ;;  %v167_v59 = vld [vmem:[#allocation2 + $0x3d8] sm:$0xff] }
  0x49   :  { %232 = vst [vmem:[#allocation7 + $0x2d0] sm:$0xff] %v104_v60  ;;  %v168_v60 = vld [vmem:[#allocation2 + $0x3e0] sm:$0xff] }
  0x4a   :  { %233 = vst [vmem:[#allocation7 + $0x2d8] sm:$0xff] %v105_v61  ;;  %v169_v61 = vld [vmem:[#allocation2 + $0x3e8] sm:$0xff] }
  0x4b   :  { %234 = vst [vmem:[#allocation7 + $0x2e0] sm:$0xff] %v106_v62  ;;  %v170_v62 = vld [vmem:[#allocation2 + $0x3f0] sm:$0xff] }
  0x4c   :  { %235 = vst [vmem:[#allocation7 + $0x2e8] sm:$0xff] %v107_v63  ;;  %v171_v63 = vld [vmem:[#allocation2 + $0x3f8] sm:$0xff] }
  0x4d   :  { %236 = vst [vmem:[#allocation7 + $0x300] sm:$0xff] %v108_v0  ;;  %v300_v0 = vld [vmem:[#allocation5] sm:$0xff] }
  0x4e   :  { %237 = vst [vmem:[#allocation7 + $0x308] sm:$0xff] %v109_v1  ;;  %v301_v1 = vld [vmem:[#allocation5 + $0x8] sm:$0xff] }
  0x4f   :  { %238 = vst [vmem:[#allocation7 + $0x310] sm:$0xff] %v110_v2  ;;  %v302_v2 = vld [vmem:[#allocation5 + $0x10] sm:$0xff] }
  0x50   :  { %239 = vst [vmem:[#allocation7 + $0x318] sm:$0xff] %v111_v3  ;;  %v303_v3 = vld [vmem:[#allocation5 + $0x18] sm:$0xff] }
  0x51   :  { %240 = vst [vmem:[#allocation7 + $0x330] sm:$0xff] %v112_v4  ;;  %v304_v4 = vld [vmem:[#allocation5 + $0x20] sm:$0xff] }
  0x52   :  { %241 = vst [vmem:[#allocation7 + $0x338] sm:$0xff] %v113_v5  ;;  %v305_v5 = vld [vmem:[#allocation5 + $0x28] sm:$0xff] }
  0x53   :  { %242 = vst [vmem:[#allocation7 + $0x340] sm:$0xff] %v114_v6  ;;  %v306_v6 = vld [vmem:[#allocation5 + $0x30] sm:$0xff] }
  0x54   :  { %243 = vst [vmem:[#allocation7 + $0x348] sm:$0xff] %v115_v7  ;;  %v307_v7 = vld [vmem:[#allocation5 + $0x38] sm:$0xff] }
  0x55   :  { %244 = vst [vmem:[#allocation7 + $0x360] sm:$0xff] %v116_v8  ;;  %v308_v8 = vld [vmem:[#allocation5 + $0x40] sm:$0xff] }
  0x56   :  { %245 = vst [vmem:[#allocation7 + $0x368] sm:$0xff] %v117_v9  ;;  %v309_v9 = vld [vmem:[#allocation5 + $0x48] sm:$0xff] }
  0x57   :  { %246 = vst [vmem:[#allocation7 + $0x370] sm:$0xff] %v118_v10  ;;  %v310_v10 = vld [vmem:[#allocation5 + $0x50] sm:$0xff] }
  0x58   :  { %247 = vst [vmem:[#allocation7 + $0x378] sm:$0xff] %v119_v11  ;;  %v311_v11 = vld [vmem:[#allocation5 + $0x58] sm:$0xff] }
  0x59   :  { %248 = vst [vmem:[#allocation7 + $0x390] sm:$0xff] %v120_v12  ;;  %v312_v12 = vld [vmem:[#allocation5 + $0x60] sm:$0xff] }
  0x5a   :  { %249 = vst [vmem:[#allocation7 + $0x398] sm:$0xff] %v121_v13  ;;  %v313_v13 = vld [vmem:[#allocation5 + $0x68] sm:$0xff] }
  0x5b   :  { %250 = vst [vmem:[#allocation7 + $0x3a0] sm:$0xff] %v122_v14  ;;  %v314_v14 = vld [vmem:[#allocation5 + $0x70] sm:$0xff] }
  0x5c   :  { %251 = vst [vmem:[#allocation7 + $0x3a8] sm:$0xff] %v123_v15  ;;  %v315_v15 = vld [vmem:[#allocation5 + $0x78] sm:$0xff] }
  0x5d   :  { %252 = vst [vmem:[#allocation7 + $0x3c0] sm:$0xff] %v124_v16  ;;  %v316_v16 = vld [vmem:[#allocation5 + $0x80] sm:$0xff] }
  0x5e   :  { %253 = vst [vmem:[#allocation7 + $0x3c8] sm:$0xff] %v125_v17  ;;  %v317_v17 = vld [vmem:[#allocation5 + $0x88] sm:$0xff] }
  0x5f   :  { %254 = vst [vmem:[#allocation7 + $0x3d0] sm:$0xff] %v126_v18  ;;  %v318_v18 = vld [vmem:[#allocation5 + $0x90] sm:$0xff] }
  0x60   :  { %255 = vst [vmem:[#allocation7 + $0x3d8] sm:$0xff] %v127_v19  ;;  %v319_v19 = vld [vmem:[#allocation5 + $0x98] sm:$0xff] }
  0x61   :  { %256 = vst [vmem:[#allocation7 + $0x3f0] sm:$0xff] %v128_v20  ;;  %v320_v20 = vld [vmem:[#allocation5 + $0xa0] sm:$0xff] }
  0x62   :  { %257 = vst [vmem:[#allocation7 + $0x3f8] sm:$0xff] %v129_v21  ;;  %v321_v21 = vld [vmem:[#allocation5 + $0xa8] sm:$0xff] }
  0x63   :  { %258 = vst [vmem:[#allocation7 + $0x400] sm:$0xff] %v130_v22  ;;  %v322_v22 = vld [vmem:[#allocation5 + $0xb0] sm:$0xff] }
  0x64   :  { %259 = vst [vmem:[#allocation7 + $0x408] sm:$0xff] %v131_v23  ;;  %v323_v23 = vld [vmem:[#allocation5 + $0xb8] sm:$0xff] }
  0x65   :  { %260 = vst [vmem:[#allocation7 + $0x420] sm:$0xff] %v132_v24  ;;  %v324_v24 = vld [vmem:[#allocation5 + $0xc0] sm:$0xff] }
  0x66   :  { %261 = vst [vmem:[#allocation7 + $0x428] sm:$0xff] %v133_v25  ;;  %v325_v25 = vld [vmem:[#allocation5 + $0xc8] sm:$0xff] }
  0x67   :  { %262 = vst [vmem:[#allocation7 + $0x430] sm:$0xff] %v134_v26  ;;  %v326_v26 = vld [vmem:[#allocation5 + $0xd0] sm:$0xff] }
  0x68   :  { %263 = vst [vmem:[#allocation7 + $0x438] sm:$0xff] %v135_v27  ;;  %v327_v27 = vld [vmem:[#allocation5 + $0xd8] sm:$0xff] }
  0x69   :  { %264 = vst [vmem:[#allocation7 + $0x450] sm:$0xff] %v136_v28  ;;  %v328_v28 = vld [vmem:[#allocation5 + $0xe0] sm:$0xff] }
  0x6a   :  { %265 = vst [vmem:[#allocation7 + $0x458] sm:$0xff] %v137_v29  ;;  %v329_v29 = vld [vmem:[#allocation5 + $0xe8] sm:$0xff] }
  0x6b   :  { %266 = vst [vmem:[#allocation7 + $0x460] sm:$0xff] %v138_v30  ;;  %v330_v30 = vld [vmem:[#allocation5 + $0xf0] sm:$0xff] }
  0x6c   :  { %267 = vst [vmem:[#allocation7 + $0x468] sm:$0xff] %v139_v31  ;;  %v331_v31 = vld [vmem:[#allocation5 + $0xf8] sm:$0xff] }
  0x6d   :  { %268 = vst [vmem:[#allocation7 + $0x480] sm:$0xff] %v140_v32  ;;  %v332_v32 = vld [vmem:[#allocation5 + $0x100] sm:$0xff] }
  0x6e   :  { %269 = vst [vmem:[#allocation7 + $0x488] sm:$0xff] %v141_v33  ;;  %v333_v33 = vld [vmem:[#allocation5 + $0x108] sm:$0xff] }
  0x6f   :  { %270 = vst [vmem:[#allocation7 + $0x490] sm:$0xff] %v142_v34  ;;  %v334_v34 = vld [vmem:[#allocation5 + $0x110] sm:$0xff] }
  0x70   :  { %271 = vst [vmem:[#allocation7 + $0x498] sm:$0xff] %v143_v35  ;;  %v335_v35 = vld [vmem:[#allocation5 + $0x118] sm:$0xff] }
  0x71   :  { %272 = vst [vmem:[#allocation7 + $0x4b0] sm:$0xff] %v144_v36  ;;  %v336_v36 = vld [vmem:[#allocation5 + $0x120] sm:$0xff] }
  0x72   :  { %273 = vst [vmem:[#allocation7 + $0x4b8] sm:$0xff] %v145_v37  ;;  %v337_v37 = vld [vmem:[#allocation5 + $0x128] sm:$0xff] }
  0x73   :  { %274 = vst [vmem:[#allocation7 + $0x4c0] sm:$0xff] %v146_v38  ;;  %v338_v38 = vld [vmem:[#allocation5 + $0x130] sm:$0xff] }
  0x74   :  { %275 = vst [vmem:[#allocation7 + $0x4c8] sm:$0xff] %v147_v39  ;;  %v339_v39 = vld [vmem:[#allocation5 + $0x138] sm:$0xff] }
  0x75   :  { %276 = vst [vmem:[#allocation7 + $0x4e0] sm:$0xff] %v148_v40  ;;  %v340_v40 = vld [vmem:[#allocation5 + $0x140] sm:$0xff] }
  0x76   :  { %277 = vst [vmem:[#allocation7 + $0x4e8] sm:$0xff] %v149_v41  ;;  %v341_v41 = vld [vmem:[#allocation5 + $0x148] sm:$0xff] }
  0x77   :  { %278 = vst [vmem:[#allocation7 + $0x4f0] sm:$0xff] %v150_v42  ;;  %v342_v42 = vld [vmem:[#allocation5 + $0x150] sm:$0xff] }
  0x78   :  { %279 = vst [vmem:[#allocation7 + $0x4f8] sm:$0xff] %v151_v43  ;;  %v343_v43 = vld [vmem:[#allocation5 + $0x158] sm:$0xff] }
  0x79   :  { %280 = vst [vmem:[#allocation7 + $0x510] sm:$0xff] %v152_v44  ;;  %v344_v44 = vld [vmem:[#allocation5 + $0x160] sm:$0xff] }
  0x7a   :  { %281 = vst [vmem:[#allocation7 + $0x518] sm:$0xff] %v153_v45  ;;  %v345_v45 = vld [vmem:[#allocation5 + $0x168] sm:$0xff] }
  0x7b   :  { %282 = vst [vmem:[#allocation7 + $0x520] sm:$0xff] %v154_v46  ;;  %v346_v46 = vld [vmem:[#allocation5 + $0x170] sm:$0xff] }
  0x7c   :  { %283 = vst [vmem:[#allocation7 + $0x528] sm:$0xff] %v155_v47  ;;  %v347_v47 = vld [vmem:[#allocation5 + $0x178] sm:$0xff] }
  0x7d   :  { %284 = vst [vmem:[#allocation7 + $0x540] sm:$0xff] %v156_v48  ;;  %v348_v48 = vld [vmem:[#allocation5 + $0x180] sm:$0xff] }
  0x7e   :  { %285 = vst [vmem:[#allocation7 + $0x548] sm:$0xff] %v157_v49  ;;  %v349_v49 = vld [vmem:[#allocation5 + $0x188] sm:$0xff] }
  0x7f   :  { %286 = vst [vmem:[#allocation7 + $0x550] sm:$0xff] %v158_v50  ;;  %v350_v50 = vld [vmem:[#allocation5 + $0x190] sm:$0xff] }
  0x80   :  { %287 = vst [vmem:[#allocation7 + $0x558] sm:$0xff] %v159_v51  ;;  %v351_v51 = vld [vmem:[#allocation5 + $0x198] sm:$0xff] }
  0x81   :  { %288 = vst [vmem:[#allocation7 + $0x570] sm:$0xff] %v160_v52  ;;  %v352_v52 = vld [vmem:[#allocation5 + $0x1a0] sm:$0xff] }
  0x82   :  { %289 = vst [vmem:[#allocation7 + $0x578] sm:$0xff] %v161_v53  ;;  %v353_v53 = vld [vmem:[#allocation5 + $0x1a8] sm:$0xff] }
  0x83   :  { %290 = vst [vmem:[#allocation7 + $0x580] sm:$0xff] %v162_v54  ;;  %v354_v54 = vld [vmem:[#allocation5 + $0x1b0] sm:$0xff] }
  0x84   :  { %291 = vst [vmem:[#allocation7 + $0x588] sm:$0xff] %v163_v55  ;;  %v355_v55 = vld [vmem:[#allocation5 + $0x1b8] sm:$0xff] }
  0x85   :  { %292 = vst [vmem:[#allocation7 + $0x5a0] sm:$0xff] %v164_v56  ;;  %v356_v56 = vld [vmem:[#allocation5 + $0x1c0] sm:$0xff] }
  0x86   :  { %293 = vst [vmem:[#allocation7 + $0x5a8] sm:$0xff] %v165_v57  ;;  %v357_v57 = vld [vmem:[#allocation5 + $0x1c8] sm:$0xff] }
  0x87   :  { %294 = vst [vmem:[#allocation7 + $0x5b0] sm:$0xff] %v166_v58  ;;  %v358_v58 = vld [vmem:[#allocation5 + $0x1d0] sm:$0xff] }
  0x88   :  { %295 = vst [vmem:[#allocation7 + $0x5b8] sm:$0xff] %v167_v59  ;;  %v359_v59 = vld [vmem:[#allocation5 + $0x1d8] sm:$0xff] }
  0x89   :  { %296 = vst [vmem:[#allocation7 + $0x5d0] sm:$0xff] %v168_v60  ;;  %v360_v60 = vld [vmem:[#allocation5 + $0x1e0] sm:$0xff] }
  0x8a   :  { %297 = vst [vmem:[#allocation7 + $0x5d8] sm:$0xff] %v169_v61  ;;  %v361_v61 = vld [vmem:[#allocation5 + $0x1e8] sm:$0xff] }
  0x8b   :  { %298 = vst [vmem:[#allocation7 + $0x5e0] sm:$0xff] %v170_v62  ;;  %v362_v62 = vld [vmem:[#allocation5 + $0x1f0] sm:$0xff] }
  0x8c   :  { %299 = vst [vmem:[#allocation7 + $0x5e8] sm:$0xff] %v171_v63  ;;  %v363_v63 = vld [vmem:[#allocation5 + $0x1f8] sm:$0xff] }
  0x8d   :  { %364 = vst [vmem:[#allocation7 + $0x20] sm:$0xff] %v300_v0 }
  0x8e   :  { %365 = vst [vmem:[#allocation7 + $0x28] sm:$0xff] %v301_v1 }
  0x8f   :  { %366 = vst [vmem:[#allocation7 + $0x50] sm:$0xff] %v302_v2 }
  0x90   :  { %367 = vst [vmem:[#allocation7 + $0x58] sm:$0xff] %v303_v3 }
  0x91   :  { %368 = vst [vmem:[#allocation7 + $0x80] sm:$0xff] %v304_v4 }
  0x92   :  { %369 = vst [vmem:[#allocation7 + $0x88] sm:$0xff] %v305_v5 }
  0x93   :  { %370 = vst [vmem:[#allocation7 + $0xb0] sm:$0xff] %v306_v6 }
  0x94   :  { %371 = vst [vmem:[#allocation7 + $0xb8] sm:$0xff] %v307_v7 }
  0x95   :  { %372 = vst [vmem:[#allocation7 + $0xe0] sm:$0xff] %v308_v8 }
  0x96   :  { %373 = vst [vmem:[#allocation7 + $0xe8] sm:$0xff] %v309_v9 }
  0x97   :  { %374 = vst [vmem:[#allocation7 + $0x110] sm:$0xff] %v310_v10 }
  0x98   :  { %375 = vst [vmem:[#allocation7 + $0x118] sm:$0xff] %v311_v11 }
  0x99   :  { %376 = vst [vmem:[#allocation7 + $0x140] sm:$0xff] %v312_v12 }
  0x9a   :  { %377 = vst [vmem:[#allocation7 + $0x148] sm:$0xff] %v313_v13 }
  0x9b   :  { %378 = vst [vmem:[#allocation7 + $0x170] sm:$0xff] %v314_v14 }
  0x9c   :  { %379 = vst [vmem:[#allocation7 + $0x178] sm:$0xff] %v315_v15 }
  0x9d   :  { %380 = vst [vmem:[#allocation7 + $0x1a0] sm:$0xff] %v316_v16 }
  0x9e   :  { %381 = vst [vmem:[#allocation7 + $0x1a8] sm:$0xff] %v317_v17 }
  0x9f   :  { %382 = vst [vmem:[#allocation7 + $0x1d0] sm:$0xff] %v318_v18 }
  0xa0   :  { %383 = vst [vmem:[#allocation7 + $0x1d8] sm:$0xff] %v319_v19 }
  0xa1   :  { %384 = vst [vmem:[#allocation7 + $0x200] sm:$0xff] %v320_v20 }
  0xa2   :  { %385 = vst [vmem:[#allocation7 + $0x208] sm:$0xff] %v321_v21 }
  0xa3   :  { %386 = vst [vmem:[#allocation7 + $0x230] sm:$0xff] %v322_v22 }
  0xa4   :  { %387 = vst [vmem:[#allocation7 + $0x238] sm:$0xff] %v323_v23 }
  0xa5   :  { %388 = vst [vmem:[#allocation7 + $0x260] sm:$0xff] %v324_v24 }
  0xa6   :  { %389 = vst [vmem:[#allocation7 + $0x268] sm:$0xff] %v325_v25 }
  0xa7   :  { %390 = vst [vmem:[#allocation7 + $0x290] sm:$0xff] %v326_v26 }
  0xa8   :  { %391 = vst [vmem:[#allocation7 + $0x298] sm:$0xff] %v327_v27 }
  0xa9   :  { %392 = vst [vmem:[#allocation7 + $0x2c0] sm:$0xff] %v328_v28 }
  0xaa   :  { %393 = vst [vmem:[#allocation7 + $0x2c8] sm:$0xff] %v329_v29 }
  0xab   :  { %394 = vst [vmem:[#allocation7 + $0x2f0] sm:$0xff] %v330_v30 }
  0xac   :  { %395 = vst [vmem:[#allocation7 + $0x2f8] sm:$0xff] %v331_v31 }
  0xad   :  { %396 = vst [vmem:[#allocation7 + $0x320] sm:$0xff] %v332_v32 }
  0xae   :  { %397 = vst [vmem:[#allocation7 + $0x328] sm:$0xff] %v333_v33 }
  0xaf   :  { %398 = vst [vmem:[#allocation7 + $0x350] sm:$0xff] %v334_v34 }
  0xb0   :  { %399 = vst [vmem:[#allocation7 + $0x358] sm:$0xff] %v335_v35 }
  0xb1   :  { %400 = vst [vmem:[#allocation7 + $0x380] sm:$0xff] %v336_v36 }
  0xb2   :  { %401 = vst [vmem:[#allocation7 + $0x388] sm:$0xff] %v337_v37 }
  0xb3   :  { %402 = vst [vmem:[#allocation7 + $0x3b0] sm:$0xff] %v338_v38 }
  0xb4   :  { %403 = vst [vmem:[#allocation7 + $0x3b8] sm:$0xff] %v339_v39 }
  0xb5   :  { %404 = vst [vmem:[#allocation7 + $0x3e0] sm:$0xff] %v340_v40 }
  0xb6   :  { %405 = vst [vmem:[#allocation7 + $0x3e8] sm:$0xff] %v341_v41 }
  0xb7   :  { %406 = vst [vmem:[#allocation7 + $0x410] sm:$0xff] %v342_v42 }
  0xb8   :  { %407 = vst [vmem:[#allocation7 + $0x418] sm:$0xff] %v343_v43 }
  0xb9   :  { %408 = vst [vmem:[#allocation7 + $0x440] sm:$0xff] %v344_v44 }
  0xba   :  { %409 = vst [vmem:[#allocation7 + $0x448] sm:$0xff] %v345_v45 }
  0xbb   :  { %410 = vst [vmem:[#allocation7 + $0x470] sm:$0xff] %v346_v46 }
  0xbc   :  { %411 = vst [vmem:[#allocation7 + $0x478] sm:$0xff] %v347_v47 }
  0xbd   :  { %412 = vst [vmem:[#allocation7 + $0x4a0] sm:$0xff] %v348_v48 }
  0xbe   :  { %413 = vst [vmem:[#allocation7 + $0x4a8] sm:$0xff] %v349_v49 }
  0xbf   :  { %414 = vst [vmem:[#allocation7 + $0x4d0] sm:$0xff] %v350_v50 }
  0xc0   :  { %415 = vst [vmem:[#allocation7 + $0x4d8] sm:$0xff] %v351_v51 }
  0xc1   :  { %416 = vst [vmem:[#allocation7 + $0x500] sm:$0xff] %v352_v52 }
  0xc2   :  { %417 = vst [vmem:[#allocation7 + $0x508] sm:$0xff] %v353_v53 }
  0xc3   :  { %418 = vst [vmem:[#allocation7 + $0x530] sm:$0xff] %v354_v54 }
  0xc4   :  { %419 = vst [vmem:[#allocation7 + $0x538] sm:$0xff] %v355_v55 }
  0xc5   :  { %420 = vst [vmem:[#allocation7 + $0x560] sm:$0xff] %v356_v56 }
  0xc6   :  { %421 = vst [vmem:[#allocation7 + $0x568] sm:$0xff] %v357_v57 }
  0xc7   :  { %422 = vst [vmem:[#allocation7 + $0x590] sm:$0xff] %v358_v58 }
  0xc8   :  { %423 = vst [vmem:[#allocation7 + $0x598] sm:$0xff] %v359_v59 }
  0xc9   :  { %424 = vst [vmem:[#allocation7 + $0x5c0] sm:$0xff] %v360_v60 }
  0xca   :  { %425 = vst [vmem:[#allocation7 + $0x5c8] sm:$0xff] %v361_v61 }
  0xcb   :  { %426 = vst [vmem:[#allocation7 + $0x5f0] sm:$0xff] %v362_v62 }
  0xcc   :  { %427 = vst [vmem:[#allocation7 + $0x5f8] sm:$0xff] %v363_v63 }
  0xcd   :  { %440 = dma.vmem_to_hbm [thread:$0]  %s433_s1, 24576, %s435_s25, [#allocation4], %s542_s26, %s542_s26, %s543_s27  }
  0xce   :  { %533 = dma.done.wait [#allocation4], 24576  }
  0xcf   :  { %534 = vsyncadd [#allocation4], 4294942720 }
  0xd0   :  { %445 = vsyncpa [#allocation3], 1 }
  0xd1   :  { %446 = vsyncpa [#allocation6], 1 }
  0xd2   :  { %447 = vsyncpa [#allocation4], 1 }

</bundles_post_ra>
